<compile_context>
chip_gen: v7x
topology: tpu7x:2x2x1
jax: 0.10.0
libtpu: 0.0.40
codegen_flags: <defaults>
</compile_context>

<pallas_src>
import jax
import jax.numpy as jnp
from jax.experimental import pallas as pl
from jax.experimental.pallas import tpu as pltpu


def _onedim_conv_kernel(feat_ref, w_ref, out_ref):
    # feat_ref: (S, TN, D) VMEM tile for (hop, node-tile)
    # w_ref:    (S, 1, D)  pre-transposed, pre-scaled (W / S) weights for this hop
    # out_ref:  (TN, D)
    feat = feat_ref[...]                                   # (S, TN, D)
    w = w_ref[...].astype(feat.dtype)                      # (S, 1, D), broadcasts over nodes
    weighted = feat * w                                    # (S, TN, D)
    # mean over S was folded into w (1/S); accumulate the S-reduction in f32.
    out_ref[...] = jnp.sum(weighted, axis=0, dtype=jnp.float32).astype(out_ref.dtype)


def _pick_tile_n(n, target):
    """Largest multiple-of-8 tile <= target that divides n (falls back gracefully)."""
    t = min(target, n)
    if t >= 8:
        t -= t % 8
    while t > 1 and n % t != 0:
        t -= 8 if t > 8 else 1
    return max(t, 1)


def onedim_convolution(feats, weights, *, tile_n=1024):
    """feats: [H, S, N, D], weights: [H, D, S] -> [H, N, D]."""
    H, S, N, D = feats.shape
    assert weights.shape == (H, D, S)

    # Hoist the transpose and the 1/S of the mean out of the kernel:
    # (H, D, S) -> (H, S, 1, D), scaled so the kernel only does a sum over S.
    w_packed = (jnp.transpose(weights, (0, 2, 1)) / jnp.asarray(S, weights.dtype))
    w_packed = w_packed[:, :, None, :]                     # (H, S, 1, D)

    tn = _pick_tile_n(N, tile_n)
    grid = (H, N // tn)

    elt = feats.dtype.itemsize
    cost = pl.CostEstimate(
        flops=2 * H * S * N * D,
        transcendentals=0,
        bytes_accessed=(H * S * N * D + H * S * D + H * N * D) * elt,
    )

    out = pl.pallas_call(
        _onedim_conv_kernel,
        out_shape=jax.ShapeDtypeStruct((H, N, D), feats.dtype),
        grid_spec=pltpu.PrefetchScalarGridSpec(
            num_scalar_prefetch=0,
            grid=grid,
            in_specs=[
                pl.BlockSpec((pl.Squeezed(), S, tn, D), lambda h, n: (h, 0, n, 0)),
                pl.BlockSpec((pl.Squeezed(), S, 1, D), lambda h, n: (h, 0, 0, 0)),
            ],
            out_specs=pl.BlockSpec((pl.Squeezed(), tn, D), lambda h, n: (h, n, 0)),
        ),
        compiler_params=pltpu.CompilerParams(
            dimension_semantics=("parallel", "parallel"),
        ),
        cost_estimate=cost,
    )(feats, w_packed)
    return out


def xavier_uniform(key, shape, dtype=jnp.float32):
    # PyTorch xavier_uniform_ for 2D [fan_out, fan_in] = [feat_dim, num_subgraphs]
    fan_out, fan_in = shape
    bound = (6.0 / (fan_in + fan_out)) ** 0.5
    return jax.random.uniform(key, shape, dtype=dtype, minval=-bound, maxval=bound)


if __name__ == "__main__":
    key = jax.random.PRNGKey(0)

    prop_steps = 3        # hop_num (H)
    num_subgraphs = 4     # S
    num_nodes = 512       # N (multiple of the node tile -> exercises N tiling)
    feat_dim = 128        # D (lane-dense output)

    k_feat, *k_ws = jax.random.split(key, 1 + prop_steps)

    # feat_list_list[i] is a list of S node-feature matrices [N, D];
    # packed here as a single array [H, S, N, D].
    feats = jax.random.normal(
        k_feat, (prop_steps, num_subgraphs, num_nodes, feat_dim), dtype=jnp.float32
    )

    # learnable_weight[i]: [feat_dim, num_subgraphs], xavier-uniform init.
    weights = jnp.stack(
        [xavier_uniform(k, (feat_dim, num_subgraphs)) for k in k_ws], axis=0
    )  # [H, D, S]

    out = onedim_convolution(feats, weights, tile_n=256)   # [H, N, D], grid (3, 2)
    out = jax.block_until_ready(out)

    # Pure-JAX reference of the PyTorch forward.
    # adopted: [N, D, S]; ref[i] = (adopted * W[i][None]).mean(-1)
    adopted = jnp.transpose(feats, (0, 2, 3, 1))                 # [H, N, D, S]
    ref = jnp.mean(adopted * weights[:, None, :, :], axis=-1)    # [H, N, D]
    assert out.shape == ref.shape
    assert jnp.allclose(out, ref, atol=1e-5, rtol=1e-5)

    # aggregated_feat_list equivalent: list of H arrays [N, D]
    aggregated_feat_list = [out[i] for i in range(prop_steps)]
    assert len(aggregated_feat_list) == prop_steps
    assert aggregated_feat_list[0].shape == (num_nodes, feat_dim)

    print("KERNEL_OK")
</pallas_src>

<mosaic_0001>
module attributes {stable_mosaic.version = 11 : i64} {
  func.func @_onedim_conv_kernel(%arg0: i32, %arg1: i32, %arg2: memref<1x4x256x128xf32, #tpu.memory_space<vmem>>, %arg3: memref<1x4x1x128xf32, #tpu.memory_space<vmem>>, %arg4: memref<1x256x128xf32, #tpu.memory_space<vmem>>) attributes {dimension_semantics = [#tpu.dimension_semantics<parallel>, #tpu.dimension_semantics<parallel>], iteration_bounds = array<i64: 3, 2>, scalar_prefetch = 0 : i64, scratch_operands = 0 : i64, tpu.core_type = #tpu.core_type<tc>, window_params = [{transform_indices = @transform_0, window_bounds = array<i64: 1, 4, 256, 128>}, {transform_indices = @transform_1, window_bounds = array<i64: 1, 4, 1, 128>}, {transform_indices = @transform_2, window_bounds = array<i64: 1, 256, 128>}]} {
    %c0 = arith.constant 0 : index
    %c0_0 = arith.constant 0 : index
    %c0_1 = arith.constant 0 : index
    %c0_2 = arith.constant 0 : index
    %0 = vector.load %arg2[%c0, %c0_0, %c0_1, %c0_2] : memref<1x4x256x128xf32, #tpu.memory_space<vmem>>, vector<1x4x256x128xf32>
    %1 = vector.shape_cast %0 : vector<1x4x256x128xf32> to vector<4x256x128xf32>
    %c0_3 = arith.constant 0 : index
    %c0_4 = arith.constant 0 : index
    %c0_5 = arith.constant 0 : index
    %c0_6 = arith.constant 0 : index
    %2 = vector.load %arg3[%c0_3, %c0_4, %c0_5, %c0_6] : memref<1x4x1x128xf32, #tpu.memory_space<vmem>>, vector<1x4x1x128xf32>
    %3 = vector.shape_cast %2 : vector<1x4x1x128xf32> to vector<4x1x128xf32>
    %4 = vector.broadcast %3 : vector<4x1x128xf32> to vector<4x256x128xf32>
    %5 = arith.mulf %1, %4 : vector<4x256x128xf32>
    %cst = arith.constant dense<0.000000e+00> : vector<256x128xf32>
    %6 = vector.multi_reduction <add>, %5, %cst [0] : vector<4x256x128xf32> to vector<256x128xf32>
    %c0_7 = arith.constant 0 : index
    %c0_8 = arith.constant 0 : index
    %c0_9 = arith.constant 0 : index
    %7 = vector.load %arg4[%c0_7, %c0_8, %c0_9] : memref<1x256x128xf32, #tpu.memory_space<vmem>>, vector<1x256x128xf32>
    %8 = vector.shape_cast %7 : vector<1x256x128xf32> to vector<256x128xf32>
    %9 = vector.shape_cast %6 : vector<256x128xf32> to vector<1x256x128xf32>
    tpu.vector_store %arg4[%c0_7, %c0_8, %c0_9], %9 {strides = array<i32>} : memref<1x256x128xf32, #tpu.memory_space<vmem>>, vector<1x256x128xf32>,
    return
  }
  func.func @transform_0(%arg0: i32, %arg1: i32) -> (i32, i32, i32, i32) {
    %c0_i32 = arith.constant 0 : i32
    %c0_i32_0 = arith.constant 0 : i32
    %c0_i32_1 = arith.constant 0 : i32
    return %arg0, %c0_i32, %arg1, %c0_i32_0 : i32, i32, i32, i32
  }
  func.func @transform_1(%arg0: i32, %arg1: i32) -> (i32, i32, i32, i32) {
    %c0_i32 = arith.constant 0 : i32
    %c0_i32_0 = arith.constant 0 : i32
    %c0_i32_1 = arith.constant 0 : i32
    %c0_i32_2 = arith.constant 0 : i32
    return %arg0, %c0_i32, %c0_i32_0, %c0_i32_1 : i32, i32, i32, i32
  }
  func.func @transform_2(%arg0: i32, %arg1: i32) -> (i32, i32, i32) {
    %c0_i32 = arith.constant 0 : i32
    %c0_i32_0 = arith.constant 0 : i32
    return %arg0, %arg1, %c0_i32 : i32, i32, i32
  }
}

</mosaic_0001>

<bundles_post_ra>
// kernel: tpu_custom_call.1
= control target key start
LH: loop header
LB: loop body
LE: loop exit
PB: predicated region body
PF: predicated region fallthrough
CT: control target
= control target key end

     0   :  { %s1694_s0 = inlined_call_operand.hbm [shape: f32[3,4,512,128], index: 0, kind: input, shape index: {}]   ;;  %s1695_s1 = inlined_call_operand.hbm [shape: f32[3,4,1,128], index: 1, kind: input, shape index: {}]   ;;  %s1696_s2 = inlined_call_operand.hbm [shape: f32[3,512,128], index: 2, kind: output, shape index: {}]  }
   0x1   :  { %1707 = sst [smem:[#allocation22_spill]] %s1696_s2 }
   0x2   :  { %7 = vsyncpa [#allocation3], 0 }
   0x3   :  { %9 = vsyncpa [#allocation3 + $0x1], 0 }
   0x4   :  { %10 = vsyncpa [#allocation6], 0 }
   0x5   :  { %12 = vsyncpa [#allocation6 + $0x1], 0 }
   0x6   :  { %13 = vsyncpa [#allocation4], 0 }
   0x7   :  { %15 = vsyncpa [#allocation4 + $0x1], 0  ;;  %s1115_s9 = smov 0   ;;  %s1117_s10 = smov 0  }
   0x8   :  { %s1119_s11 = smov 0   ;;  %s1121_s12 = smov 0  }
   0x9   :  { %s1123_s13 = smov 0   ;;  %s1125_s14 = smov 0  }
   0xa   :  { %s1127_s15 = smov 0   ;;  %s1129_s16 = smov 0  }
   0xb   :  { %s1131_s17 = smov 0   ;;  %s1133_s18 = smov 0  }
   0xc   :  { %s1135_s19 = smov 0  }
   0xd LB: > { %1708 = sst [smem:[#allocation14_spill]] %s1058_s12  ;;  %s788_s20 = sadd.s32 4294967295, %s1086_s19   ;;  %s1086_s19 = sphi %s1135_s19, %s21_s19   ;;  %s1082_s18 = sphi %s1133_s18, %s1743_s18   ;;  %s1078_s17 = sphi %s1131_s17, %s1735_s17   ;;  %s1074_s16 = sphi %s1129_s16, %s1742_s16   ;;  %s1070_s15 = sphi %s1127_s15, %s1734_s15   ;;  %s1066_s14 = sphi %s1125_s14, %s1733_s14   ;;  %s1062_s13 = sphi %s1123_s13, %s1741_s13   ;;  %s1058_s12 = sphi %s1121_s12, %s1740_s12   ;;  %s1054_s11 = sphi %s1119_s11, %s1739_s11   ;;  %s1050_s10 = sphi %s1117_s10, %s1738_s10   ;;  %s1046_s9 = sphi %s1115_s9, %s1737_s9  }
   0xe   : > { %1709 = sst [smem:[#allocation15_spill]] %s1066_s14  ;;  %s789_s21 = sadd.s32 4294967294, %s1086_s19  }
   0xf   : > { %1710 = sst [smem:[#allocation16_spill]] %s1078_s17  ;;  %s30_s22 = sadd.s32 1, %s1078_s17 }
  0x10   : > { %s33_s23 = sadd.s32 1, %s1082_s18  ;;  %p31_p0 = scmp.ge.s32.totalorder %s30_s22, 2 }
  0x11   : > { %s42_s24 = sadd.s32 1, %s1066_s14  ;;  %p49_p1 = scmp.ne.s32.totalorder %s1066_s14, %s1062_s13 }
  0x12   : > { %p50_p2 = scmp.eq.s32.totalorder %s1086_s19, 0  ;;  %s1745_s22 = smov (%p31_p0, %s30_s22), 0 }
  0x13   : > { %1711 = sst [smem:[#allocation17_spill]] %s1745_s22  ;;  %s1747_s23 = smov (!%p31_p0, %s33_s23), %s1082_s18 }
  0x14   : > { %s38_s25 = ssub.s32 %s1078_s17, %s1745_s22  ;;  %p1188_p3 = por %p50_p2, %p49_p1 }
  0x15   : > { %p35_p4 = scmp.ge.s32.totalorder %s1747_s23, 3  ;;  %p1697_p5 = scmp.ne.s32.totalorder %s1062_s13, %s1058_s12 }
  0x16   : > { %p1194_p6 = scmp.eq.s32.totalorder %s788_s20, 0  ;;  %s68_s28 = sadd.s32 1, %s1054_s11 }
  0x17   : > { %s1749_s23 = smov (%p35_p4, %s1747_s23), 0  ;;  %p75_p8 = scmp.ne.s32.totalorder %s1054_s11, %s1050_s10 }
  0x18   : > { %1714 = sst [smem:[#allocation18_spill]] %s1749_s23  ;;  %p1206_p7 = por %p1194_p6, %p1697_p5 }
  0x19   : > { %s37_s30 = ssub.s32 %s1082_s18, %s1749_s23  ;;  %p81_p9 = scmp.ne.s32.totalorder %s1050_s10, %s1046_s9 }
  0x1a   : > { %s39_s3 = sor.u32 %s38_s25, %s37_s30  ;;  %p66_p10 = scmp.eq.s32.totalorder %s37_s30, 0 }
  0x1b   : > { %p40_p11 = scmp.eq.s32.totalorder %s39_s3, 0  ;;  %p1218_p12 = por %p75_p8, %p50_p2 }
  0x1c   : > { %s1223_s5 = scalar_select %p66_p10, %s1054_s11, %s68_s28  }
  0x1d   : > { %s1226_s6 = scalar_select %p40_p11, %s1066_s14, %s42_s24  }
  0x1e   : > { %1717 = sst [smem:[#allocation19_spill]] %s1223_s5  ;;  %p1230_p13 = por %p81_p9, %p1194_p6 }
  0x1f   : > { %1718 = sst [smem:[#allocation20_spill]] %s1226_s6  ;;  %p107_p0 = scmp.eq.s32.totalorder %s788_s20, 5 }
  0x20   : > { %s1719_s7 = scalar_select %p1230_p13, 1, 0 }
  0x21   : > { %p113_p4 = scmp.eq.s32.totalorder %s789_s21, 5  ;;  %p1237_p5 = por %p107_p0, %p49_p1 }
  0x22   : > { %p1721_p2 = scmp.ne.s32.totalorder %s1062_s13, %s1058_s12  ;;  %p791_p10 = scmp.ge.s32.totalorder %s1086_s19, 6 }
  0x23   : > { %s1720_s8 = scalar_select %p1237_p5, 1, 0 }
  0x24   : > { %p1244_p8 = por %p113_p4, %p1721_p2  ;;  %129 = sbr.rel (%p791_p10) target bundleno = 84 (0x54), region = 16 }
  0x26   : > { %s1722_s9 = scalar_select %p1244_p8, 1, 0 }
  0x28   : > { %1723 = sst [smem:[#allocation21_spill]] %s1722_s9 }
  0x2b   : > { %s133_s20 = sand.u32 1, %s1066_s14   ;;  %s793_s21 = sshll.u32 %s1078_s17, 5 }
  0x2c   : > { %s792_s24 = sshll.u32 %s133_s20, 10  ;;  %s794_s25 = sshll.u32 %s1082_s18, 8 }
  0x2d   : > { %s143_s27 = sadd.s32 %s794_s25, %s793_s21  ;;  %s137_s28 = scalar_lea.vmem [#allocation2], %s792_s24 }
  0x2e   : > { %s158_s30 = sshll.u32 %s137_s28, 4  ;;  %s795_s3 = sshll.u32 %s143_s27, 7  ;;  %s159_s30 = int_to_ptr.vmem [resolvable:$true] %s158_s30 }
  0x2f   : > { %s816_s23 = scalar_select %p1188_p3, [#allocation0], [#allocation10] }
  0x30   : > { %s1088_s22 = smov 8192   ;;  %s1089_s5 = smov 4096  }
  0x31   : > { %817 = sst [smem:[#allocation9]] (%p1188_p3), %s1088_s22  ;;  %s1090_s17 = smov 32  }
  0x32   : > { %s150_s6 = sld [smem:[%s816_s23]]   ;;  %s1091_s21 = smov 128  }
  0x33   : > { %818 = sst [smem:[#allocation9 + $0x1]] (%p1188_p3), %s1089_s5  ;;  %s145_s27 = scalar_lea.hbm %s1694_s0, %s795_s3 }
  0x34   : > { %819 = sst [smem:[#allocation9 + $0x2]] (%p1188_p3), %s1090_s17  ;;  %s1092_s28 = smov 8  }
  0x35   : > { %820 = sst [smem:[#allocation9 + $0x3]] (%p1188_p3), %s1091_s21  ;;  %s134_s14 = scalar_lea.sflag [#allocation3], %s133_s20 }
  0x36   : > { %821 = sst [smem:[#allocation9 + $0x4]] (%p1188_p3), %s1091_s21  ;;  %s1093_s5 = smov [#allocation8]  }
  0x37   : > { %822 = sst [smem:[#allocation9 + $0x5]] (%p1188_p3), %s1092_s28  ;;  %s181_s17 = sand.u32 1, %s1054_s11  }
  0x38   : > { %s796_s22 = sshll.u32 %s150_s6, 26  ;;  %s815_s9 = sshll.u32 %s1082_s18, 6 }
  0x39   : > { %s797_s23 = sadd.s32 134217728, %s796_s22  ;;  %s798_s12 = sshll.u32 %s181_s17, 2 }
  0x3a   : > { %823 = dma.general (%p1188_p3), %s145_s27, 16384, %s159_s30, %s134_s14, %s1093_s5, [#allocation9], %s797_s23, 0  }
  0x3b   : > { %s1276_s3 = scalar_lea.hbm %s1695_s1, %s815_s9  ;;  %s185_s6 = scalar_lea.vmem [#allocation5], %s798_s12 }
  0x3c   : > { %s192_s20 = sshll.u32 %s185_s6, 4  ;;  %s1280_s14 = scalar_lea.sflag [#allocation6], %s181_s17  ;;  %s1278_s20 = int_to_ptr.vmem [resolvable:$true] %s192_s20 }
  0x3d   : > { %s932_s26 = scalar_lea.hbm %s1276_s3, 64  ;;  %s936_s2 = scalar_lea.hbm %s1695_s1, 192 }
  0x3e   : > { %p933_p1 = scmp.ne.s32.totalorder %s1276_s3, %s932_s26  ;;  %p937_p9 = scmp.lt.u32.totalorder %s1276_s3, %s1695_s1 }
  0x3f   : > { %p938_p11 = scmp.lt.u32.totalorder %s936_s2, %s932_s26  ;;  %p940_p4 = scmp.lt.u32.totalorder %s932_s26, %s1276_s3 }
  0x40   : > { %p934_p3 = pnand %p933_p1, %p1218_p12 }
  0x41   : > { %p939_p0 = por %p938_p11, %p937_p9 }
  0x42   : > { %p935_p6 = pneg %p934_p3 }
  0x43   : > { %p941_p2 = por %p940_p4, %p939_p0 }
  0x45   : > { %p942_p10 = pnand %p941_p2, %p935_p6 }
  0x47   : > { %945 = shalt.err (!%p942_p10)
}
  0x48   : > { %s946_s12 = scalar_lea.vmem %s1278_s20, 64  ;;  %s1094_s27 = smov [#allocation5]  }
  0x49   : > { %p947_p1 = scmp.ne.s32.totalorder %s1278_s20, %s946_s12  ;;  %s950_s28 = sshll.u32 %s1094_s27, 4  ;;  %s951_s28 = int_to_ptr.vmem [resolvable:$false] %s950_s28 }
  0x4a   : > { %s952_s22 = scalar_lea.vmem %s951_s28, 128  ;;  %p953_p5 = scmp.lt.s32.totalorder %s1278_s20, %s951_s28 }
  0x4b   : > { %p948_p3 = pnand %p947_p1, %p1218_p12  ;;  %p954_p13 = scmp.lt.s32.totalorder %s952_s22, %s946_s12 }
  0x4d   : > { %p949_p8 = pneg %p948_p3  ;;  %p955_p9 = por %p954_p13, %p953_p5 }
  0x4f   : > { %p956_p11 = pnand %p955_p9, %p949_p8 }
  0x51   : > { %959 = shalt.err (!%p956_p11)
}
  0x52   : > { %s1095_s23 = smov 16   ;;  %s1096_s5 = smov 1  }
  0x53   : > { %824 = dma.hbm_to_vmem [thread:$0]  (%p1218_p12), %s1276_s3, 64, %s1278_s20, %s1280_s14, %s1095_s23, %s1095_s23, %s1096_s5  }
  0x54 PF: > { %p801_p6 = scmp.ge.s32.totalorder %s1086_s19, 1  ;;  %p200_p0 = scmp.lt.s32.totalorder %s1086_s19, 7 }
  0x56   : > { %p201_p4 = pnand %p801_p6, %p200_p0 }
  0x57   : > { %s1307_s17 = sand.u32 (!%p201_p4), 1, %s1062_s13  }
  0x58   : > { %204 = sbr.rel (%p201_p4) target bundleno = 181 (0xb5), region = 28  ;;  %s802_s24 = sshll.u32 (!%p201_p4), %s1307_s17, 10 }
  0x59   : > { %s207_s6 = scalar_lea.sflag (!%p201_p4), [#allocation3], %s1307_s17  ;;  %s1311_s26 = scalar_lea.vmem (!%p201_p4), [#allocation2], %s802_s24 }
  0x5f   : > { %1033 = dma.done.wait (%p1206_p7), %s207_s6, 16384  }
  0x60   : > { %1035 = vsyncadd (%p1206_p7), %s207_s6, 4294950912  ;;  %s215_s4 = sand.u32 1, %s1050_s10   ;;  %p1724_p5 = scmp.ne.s32.totalorder %s1719_s7, 0 }
  0x61   : > { %s803_s3 = sshll.u32 %s215_s4, 2  ;;  %s216_s20 = scalar_lea.sflag [#allocation6], %s215_s4 }
  0x62   : > { %s219_s14 = scalar_lea.vmem [#allocation5], %s803_s3 }
  0x63   : > { %1037 = dma.done.wait (%p1724_p5), %s216_s20, 64  }
  0x64   : > { %1039 = vsyncadd (%p1724_p5), %s216_s20, 4294967232  ;;  %v247_v0 = vld [vmem:[%s1311_s26] sm:$0xff]  ;;  %v248_v10 = vld [vmem:[%s1311_s26 + $0x8] sm:$0xff]  ;;  %s804_s29 = sshll.u32 %s1307_s17, 8  ;;  %s810_s30 = sshll.u32 %s1070_s15, 5 }
  0x65   : > { %v279_v1 = vld [vmem:[%s1311_s26 + $0x100] sm:$0xff]  ;;  %v280_v12 = vld [vmem:[%s1311_s26 + $0x108] sm:$0xff]  ;;  %v249_v20 = vld [vmem:[%s1311_s26 + $0x10] sm:$0xff]  ;;  %s1379_s7 = scalar_lea.vmem [#allocation7], %s804_s29  ;;  %s811_s21 = sshll.u32 %s1074_s16, 6 }
  0x66   : > { %v311_v2 = vld [vmem:[%s1311_s26 + $0x200] sm:$0xff]  ;;  %v312_v13 = vld [vmem:[%s1311_s26 + $0x208] sm:$0xff]  ;;  %v281_v21 = vld [vmem:[%s1311_s26 + $0x110] sm:$0xff]  ;;  %s672_s15 = sadd.s32 %s811_s21, %s810_s30  ;;  %s675_s16 = sshll.u32 %s1379_s7, 4  ;;  %s1624_s16 = int_to_ptr.vmem [resolvable:$true] %s675_s16 }
  0x67   : > { %v343_v3 = vld [vmem:[%s1311_s26 + $0x300] sm:$0xff]  ;;  %v344_v14 = vld [vmem:[%s1311_s26 + $0x308] sm:$0xff]  ;;  %v313_v22 = vld [vmem:[%s1311_s26 + $0x210] sm:$0xff]  ;;  %s812_s2 = sshll.u32 %s672_s15, 7  ;;  %s1725_s12 = sld [smem:[#allocation22_spill]] }
  0x68   : > { %v1326_v4 = vld [vmem:[%s219_s14] ss:$0 sm:$0xff]  ;;  %v1328_v5 = vld [vmem:[%s219_s14 + $0x1] ss:$0 sm:$0xff]  ;;  %v1330_v6 = vld [vmem:[%s219_s14 + $0x2] ss:$0 sm:$0xff] }
  0x69   : > { %v1332_v7 = vld [vmem:[%s219_s14 + $0x3] ss:$0 sm:$0xff]  ;;  %v403_v8 = vmul.f32 %v1326_v4, %v247_v0  ;;  %v435_v9 = vmul.f32 %v1328_v5, %v279_v1  ;;  %v467_v11 = vmul.f32 %v1330_v6, %v311_v2  ;;  %v404_v15 = vmul.f32 %v1326_v4, %v248_v10  ;;  %v345_v24 = vld [vmem:[%s1311_s26 + $0x310] sm:$0xff]  ;;  %v250_v28 = vld [vmem:[%s1311_s26 + $0x18] sm:$0xff]  ;;  %s660_s22 = scalar_lea.sflag [#allocation4], %s1307_s17  ;;  %s960_s23 = scalar_lea.vmem %s1624_s16, 4096 }
  0x6a   : > { %v499_v16 = vmul.f32 %v1332_v7, %v343_v3  ;;  %v436_v18 = vmul.f32 %v1328_v5, %v280_v12  ;;  %v468_v19 = vmul.f32 %v1330_v6, %v312_v13  ;;  %v500_v23 = vmul.f32 %v1332_v7, %v344_v14  ;;  %v282_v29 = vld [vmem:[%s1311_s26 + $0x118] sm:$0xff]  ;;  %v251_v36 = vld [vmem:[%s1311_s26 + $0x20] sm:$0xff]  ;;  %v252_v48 = vld [vmem:[%s1311_s26 + $0x28] sm:$0xff]  ;;  %p961_p7 = scmp.ne.s32.totalorder %s1624_s16, %s960_s23  ;;  %p1727_p12 = scmp.ne.s32.totalorder %s1720_s8, 0 }
  0x6b   : > { %v531_v17 = vadd.f32 %v435_v9, %v403_v8  ;;  %v405_v25 = vmul.f32 %v1326_v4, %v249_v20  ;;  %v437_v26 = vmul.f32 %v1328_v5, %v281_v21  ;;  %v469_v27 = vmul.f32 %v1330_v6, %v313_v22  ;;  %v314_v33 = vld [vmem:[%s1311_s26 + $0x218] sm:$0xff]  ;;  %v283_v41 = vld [vmem:[%s1311_s26 + $0x120] sm:$0xff]  ;;  %v284_v49 = vld [vmem:[%s1311_s26 + $0x128] sm:$0xff]  ;;  %s1097_s5 = smov [#allocation7]  }
  0x6c   : > { %v534_v31 = vadd.f32 %v436_v18, %v404_v15  ;;  %v501_v32 = vmul.f32 %v1332_v7, %v345_v24  ;;  %v346_v34 = vld [vmem:[%s1311_s26 + $0x318] sm:$0xff]  ;;  %v406_v35 = vmul.f32 %v1326_v4, %v250_v28  ;;  %v438_v38 = vmul.f32 %v1328_v5, %v282_v29  ;;  %v315_v42 = vld [vmem:[%s1311_s26 + $0x220] sm:$0xff]  ;;  %v316_v50 = vld [vmem:[%s1311_s26 + $0x228] sm:$0xff]  ;;  %p962_p13 = pnand %p961_p7, %p1727_p12  ;;  %s964_s24 = sshll.u32 %s1097_s5, 4  ;;  %s965_s24 = int_to_ptr.vmem [resolvable:$false] %s964_s24 }
  0x6d   : > { %v532_v30 = vadd.f32 %v531_v17, %v467_v11  ;;  %v537_v37 = vadd.f32 %v437_v26, %v405_v25  ;;  %v470_v39 = vmul.f32 %v1330_v6, %v314_v33  ;;  %v502_v40 = vmul.f32 %v1332_v7, %v346_v34  ;;  %v347_v43 = vld [vmem:[%s1311_s26 + $0x320] sm:$0xff]  ;;  %v348_v55 = vld [vmem:[%s1311_s26 + $0x328] sm:$0xff]  ;;  %v253_v56 = vld [vmem:[%s1311_s26 + $0x30] sm:$0xff]  ;;  %s1726_s27 = smov %s1725_s12  ;;  %s1630_s28 = scalar_lea.hbm %s1725_s12, %s812_s2 }
  0x6e   : > { %v535_v45 = vadd.f32 %v534_v31, %v468_v19  ;;  %v407_v46 = vmul.f32 %v1326_v4, %v251_v36  ;;  %v439_v47 = vmul.f32 %v1328_v5, %v283_v41  ;;  %v540_v52 = vadd.f32 %v438_v38, %v406_v35  ;;  %v285_v57 = vld [vmem:[%s1311_s26 + $0x130] sm:$0xff]  ;;  %v254_v0 = vld [vmem:[%s1311_s26 + $0x38] sm:$0xff]  ;;  %v287_v17 = vld [vmem:[%s1311_s26 + $0x140] sm:$0xff]  ;;  %p963_p8 = pneg %p962_p13  ;;  %s966_s6 = scalar_lea.vmem %s965_s24, 8192 }
  0x6f   : > { %v533_v44 = vadd.f32 %v532_v30, %v499_v16  ;;  %v538_v51 = vadd.f32 %v537_v37, %v469_v27  ;;  %v471_v53 = vmul.f32 %v1330_v6, %v315_v42  ;;  %v503_v54 = vmul.f32 %v1332_v7, %v347_v43  ;;  %v317_v62 = vld [vmem:[%s1311_s26 + $0x230] sm:$0xff]  ;;  %v286_v9 = vld [vmem:[%s1311_s26 + $0x138] sm:$0xff]  ;;  %v255_v16 = vld [vmem:[%s1311_s26 + $0x40] sm:$0xff]  ;;  %p967_p2 = scmp.lt.s32.totalorder %s1624_s16, %s965_s24  ;;  %p968_p10 = scmp.lt.s32.totalorder %s966_s6, %s960_s23 }
  0x70   : > { %v536_v58 = vadd.f32 %v535_v45, %v500_v23  ;;  %v543_v59 = vadd.f32 %v439_v47, %v407_v46  ;;  %v408_v60 = vmul.f32 %v1326_v4, %v252_v48  ;;  %v440_v61 = vmul.f32 %v1328_v5, %v284_v49  ;;  %v349_v63 = vld [vmem:[%s1311_s26 + $0x330] sm:$0xff]  ;;  %v318_v10 = vld [vmem:[%s1311_s26 + $0x238] sm:$0xff]  ;;  %v319_v22 = vld [vmem:[%s1311_s26 + $0x240] sm:$0xff] }
  0x71   : > { %627 = vst [vmem:[%s1379_s7] sm:$0xff] %v533_v44  ;;  %v539_v1 = vadd.f32 %v538_v51, %v501_v32  ;;  %v541_v2 = vadd.f32 %v540_v52, %v470_v39  ;;  %v472_v3 = vmul.f32 %v1330_v6, %v316_v50  ;;  %v504_v8 = vmul.f32 %v1332_v7, %v348_v55  ;;  %v350_v15 = vld [vmem:[%s1311_s26 + $0x338] sm:$0xff]  ;;  %v351_v27 = vld [vmem:[%s1311_s26 + $0x340] sm:$0xff]  ;;  %v256_v28 = vld [vmem:[%s1311_s26 + $0x48] sm:$0xff]  ;;  %p969_p1 = por %p968_p10, %p967_p2 }
  0x72   : > { %628 = vst [vmem:[%s1379_s7 + $0x8] sm:$0xff] %v536_v58  ;;  %v544_v11 = vadd.f32 %v543_v59, %v471_v53  ;;  %v546_v12 = vadd.f32 %v440_v61, %v408_v60  ;;  %v409_v13 = vmul.f32 %v1326_v4, %v253_v56  ;;  %v441_v14 = vmul.f32 %v1328_v5, %v285_v57  ;;  %v288_v29 = vld [vmem:[%s1311_s26 + $0x148] sm:$0xff]  ;;  %v289_v41 = vld [vmem:[%s1311_s26 + $0x150] sm:$0xff]  ;;  %v258_v48 = vld [vmem:[%s1311_s26 + $0x58] sm:$0xff] }
  0x73   : > { %629 = vst [vmem:[%s1379_s7 + $0x10] sm:$0xff] %v539_v1  ;;  %v542_v18 = vadd.f32 %v541_v2, %v502_v40  ;;  %v473_v19 = vmul.f32 %v1330_v6, %v317_v62  ;;  %v505_v20 = vmul.f32 %v1332_v7, %v349_v63  ;;  %v410_v21 = vmul.f32 %v1326_v4, %v254_v0  ;;  %v320_v34 = vld [vmem:[%s1311_s26 + $0x248] sm:$0xff]  ;;  %v257_v40 = vld [vmem:[%s1311_s26 + $0x50] sm:$0xff]  ;;  %v290_v53 = vld [vmem:[%s1311_s26 + $0x158] sm:$0xff]  ;;  %p970_p3 = pnand %p969_p1, %p963_p8 }
  0x74   : > { %v545_v23 = vadd.f32 %v544_v11, %v503_v54  ;;  %v547_v24 = vadd.f32 %v546_v12, %v472_v3  ;;  %v549_v25 = vadd.f32 %v441_v14, %v409_v13  ;;  %v442_v26 = vmul.f32 %v1328_v5, %v286_v9  ;;  %v352_v35 = vld [vmem:[%s1311_s26 + $0x348] sm:$0xff]  ;;  %v321_v46 = vld [vmem:[%s1311_s26 + $0x250] sm:$0xff]  ;;  %v322_v54 = vld [vmem:[%s1311_s26 + $0x258] sm:$0xff] }
  0x75   : > { %630 = vst [vmem:[%s1379_s7 + $0x18] sm:$0xff] %v542_v18  ;;  %v474_v30 = vmul.f32 %v1330_v6, %v318_v10  ;;  %v506_v31 = vmul.f32 %v1332_v7, %v350_v15  ;;  %v411_v32 = vmul.f32 %v1326_v4, %v255_v16  ;;  %v443_v33 = vmul.f32 %v1328_v5, %v287_v17  ;;  %v353_v47 = vld [vmem:[%s1311_s26 + $0x350] sm:$0xff]  ;;  %v354_v59 = vld [vmem:[%s1311_s26 + $0x358] sm:$0xff]  ;;  %v259_v60 = vld [vmem:[%s1311_s26 + $0x60] sm:$0xff] }
  0x76   : > { %631 = vst [vmem:[%s1379_s7 + $0x20] sm:$0xff] %v545_v23  ;;  %v548_v36 = vadd.f32 %v547_v24, %v504_v8  ;;  %v550_v37 = vadd.f32 %v549_v25, %v473_v19  ;;  %v552_v38 = vadd.f32 %v442_v26, %v410_v21  ;;  %v475_v39 = vmul.f32 %v1330_v6, %v319_v22  ;;  %v291_v61 = vld [vmem:[%s1311_s26 + $0x160] sm:$0xff]  ;;  %v260_v12 = vld [vmem:[%s1311_s26 + $0x68] sm:$0xff]  ;;  %v261_v24 = vld [vmem:[%s1311_s26 + $0x70] sm:$0xff] }
  0x77   : > { %v507_v42 = vmul.f32 %v1332_v7, %v351_v27  ;;  %v555_v43 = vadd.f32 %v443_v33, %v411_v32  ;;  %v412_v44 = vmul.f32 %v1326_v4, %v256_v28  ;;  %v444_v45 = vmul.f32 %v1328_v5, %v288_v29  ;;  %v323_v2 = vld [vmem:[%s1311_s26 + $0x260] sm:$0xff]  ;;  %v292_v13 = vld [vmem:[%s1311_s26 + $0x168] sm:$0xff]  ;;  %v293_v25 = vld [vmem:[%s1311_s26 + $0x170] sm:$0xff] }
  0x78   : > { %632 = vst [vmem:[%s1379_s7 + $0x28] sm:$0xff] %v548_v36  ;;  %v551_v49 = vadd.f32 %v550_v37, %v505_v20  ;;  %v553_v50 = vadd.f32 %v552_v38, %v474_v30  ;;  %v476_v51 = vmul.f32 %v1330_v6, %v320_v34  ;;  %v508_v52 = vmul.f32 %v1332_v7, %v352_v35  ;;  %v355_v11 = vld [vmem:[%s1311_s26 + $0x360] sm:$0xff]  ;;  %v324_v18 = vld [vmem:[%s1311_s26 + $0x268] sm:$0xff]  ;;  %v325_v30 = vld [vmem:[%s1311_s26 + $0x270] sm:$0xff] }
  0x79   : > { %v556_v55 = vadd.f32 %v555_v43, %v475_v39  ;;  %v558_v56 = vadd.f32 %v444_v45, %v412_v44  ;;  %v413_v57 = vmul.f32 %v1326_v4, %v257_v40  ;;  %v445_v58 = vmul.f32 %v1328_v5, %v289_v41  ;;  %v356_v19 = vld [vmem:[%s1311_s26 + $0x368] sm:$0xff]  ;;  %v262_v32 = vld [vmem:[%s1311_s26 + $0x78] sm:$0xff]  ;;  %v263_v44 = vld [vmem:[%s1311_s26 + $0x80] sm:$0xff] }
  0x7a   : > { %633 = vst [vmem:[%s1379_s7 + $0x30] sm:$0xff] %v551_v49  ;;  %v554_v62 = vadd.f32 %v553_v50, %v506_v31  ;;  %v477_v63 = vmul.f32 %v1330_v6, %v321_v46  ;;  %v509_v0 = vmul.f32 %v1332_v7, %v353_v47  ;;  %v414_v1 = vmul.f32 %v1326_v4, %v258_v48  ;;  %v357_v31 = vld [vmem:[%s1311_s26 + $0x370] sm:$0xff]  ;;  %v294_v37 = vld [vmem:[%s1311_s26 + $0x178] sm:$0xff]  ;;  %v295_v45 = vld [vmem:[%s1311_s26 + $0x180] sm:$0xff] }
  0x7b   : > { %v557_v3 = vadd.f32 %v556_v55, %v507_v42  ;;  %v559_v8 = vadd.f32 %v558_v56, %v476_v51  ;;  %v561_v9 = vadd.f32 %v445_v58, %v413_v57  ;;  %v446_v10 = vmul.f32 %v1328_v5, %v290_v53  ;;  %v326_v38 = vld [vmem:[%s1311_s26 + $0x278] sm:$0xff]  ;;  %v327_v50 = vld [vmem:[%s1311_s26 + $0x280] sm:$0xff]  ;;  %v264_v56 = vld [vmem:[%s1311_s26 + $0x88] sm:$0xff] }
  0x7c   : > { %634 = vst [vmem:[%s1379_s7 + $0x38] sm:$0xff] %v554_v62  ;;  %v478_v14 = vmul.f32 %v1330_v6, %v322_v54  ;;  %v510_v15 = vmul.f32 %v1332_v7, %v354_v59  ;;  %v415_v16 = vmul.f32 %v1326_v4, %v259_v60  ;;  %v447_v17 = vmul.f32 %v1328_v5, %v291_v61  ;;  %v358_v43 = vld [vmem:[%s1311_s26 + $0x378] sm:$0xff]  ;;  %v359_v55 = vld [vmem:[%s1311_s26 + $0x380] sm:$0xff]  ;;  %v296_v57 = vld [vmem:[%s1311_s26 + $0x188] sm:$0xff] }
  0x7d   : > { %635 = vst [vmem:[%s1379_s7 + $0x40] sm:$0xff] %v557_v3  ;;  %v560_v20 = vadd.f32 %v559_v8, %v508_v52  ;;  %v562_v21 = vadd.f32 %v561_v9, %v477_v63  ;;  %v564_v22 = vadd.f32 %v446_v10, %v414_v1  ;;  %v479_v23 = vmul.f32 %v1330_v6, %v323_v2  ;;  %v328_v62 = vld [vmem:[%s1311_s26 + $0x288] sm:$0xff]  ;;  %v265_v8 = vld [vmem:[%s1311_s26 + $0x90] sm:$0xff] }
  0x7e   : > { %v511_v26 = vmul.f32 %v1332_v7, %v355_v11  ;;  %v567_v27 = vadd.f32 %v447_v17, %v415_v16  ;;  %v416_v28 = vmul.f32 %v1326_v4, %v260_v12  ;;  %v448_v29 = vmul.f32 %v1328_v5, %v292_v13  ;;  %v360_v63 = vld [vmem:[%s1311_s26 + $0x388] sm:$0xff]  ;;  %v297_v9 = vld [vmem:[%s1311_s26 + $0x190] sm:$0xff]  ;;  %v266_v16 = vld [vmem:[%s1311_s26 + $0x98] sm:$0xff] }
  0x7f   : > { %636 = vst [vmem:[%s1379_s7 + $0x48] sm:$0xff] %v560_v20  ;;  %v563_v33 = vadd.f32 %v562_v21, %v509_v0  ;;  %v565_v34 = vadd.f32 %v564_v22, %v478_v14  ;;  %v480_v35 = vmul.f32 %v1330_v6, %v324_v18  ;;  %v512_v36 = vmul.f32 %v1332_v7, %v356_v19  ;;  %v329_v14 = vld [vmem:[%s1311_s26 + $0x290] sm:$0xff]  ;;  %v298_v21 = vld [vmem:[%s1311_s26 + $0x198] sm:$0xff] }
  0x80   : > { %v568_v39 = vadd.f32 %v567_v27, %v479_v23  ;;  %v570_v40 = vadd.f32 %v448_v29, %v416_v28  ;;  %v417_v41 = vmul.f32 %v1326_v4, %v261_v24  ;;  %v449_v42 = vmul.f32 %v1328_v5, %v293_v25  ;;  %v330_v22 = vld [vmem:[%s1311_s26 + $0x298] sm:$0xff]  ;;  %v267_v28 = vld [vmem:[%s1311_s26 + $0xa0] sm:$0xff] }
  0x81   : > { %637 = vst [vmem:[%s1379_s7 + $0x50] sm:$0xff] %v563_v33  ;;  %v566_v46 = vadd.f32 %v565_v34, %v510_v15  ;;  %v481_v47 = vmul.f32 %v1330_v6, %v325_v30  ;;  %v513_v48 = vmul.f32 %v1332_v7, %v357_v31  ;;  %v418_v49 = vmul.f32 %v1326_v4, %v262_v32  ;;  %v361_v15 = vld [vmem:[%s1311_s26 + $0x390] sm:$0xff]  ;;  %v362_v27 = vld [vmem:[%s1311_s26 + $0x398] sm:$0xff]  ;;  %v299_v29 = vld [vmem:[%s1311_s26 + $0x1a0] sm:$0xff] }
  0x82   : > { %v569_v51 = vadd.f32 %v568_v39, %v511_v26  ;;  %v571_v52 = vadd.f32 %v570_v40, %v480_v35  ;;  %v573_v53 = vadd.f32 %v449_v42, %v417_v41  ;;  %v450_v54 = vmul.f32 %v1328_v5, %v294_v37  ;;  %v331_v34 = vld [vmem:[%s1311_s26 + $0x2a0] sm:$0xff]  ;;  %v268_v40 = vld [vmem:[%s1311_s26 + $0xa8] sm:$0xff] }
  0x83   : > { %638 = vst [vmem:[%s1379_s7 + $0x58] sm:$0xff] %v566_v46  ;;  %v482_v58 = vmul.f32 %v1330_v6, %v326_v38  ;;  %v514_v59 = vmul.f32 %v1332_v7, %v358_v43  ;;  %v419_v60 = vmul.f32 %v1326_v4, %v263_v44  ;;  %v451_v61 = vmul.f32 %v1328_v5, %v295_v45  ;;  %v363_v39 = vld [vmem:[%s1311_s26 + $0x3a0] sm:$0xff]  ;;  %v300_v41 = vld [vmem:[%s1311_s26 + $0x1a8] sm:$0xff] }
  0x84   : > { %639 = vst [vmem:[%s1379_s7 + $0x60] sm:$0xff] %v569_v51  ;;  %v572_v0 = vadd.f32 %v571_v52, %v512_v36  ;;  %v574_v1 = vadd.f32 %v573_v53, %v481_v47  ;;  %v576_v2 = vadd.f32 %v450_v54, %v418_v49  ;;  %v483_v3 = vmul.f32 %v1330_v6, %v327_v50  ;;  %v332_v46 = vld [vmem:[%s1311_s26 + $0x2a8] sm:$0xff]  ;;  %v269_v52 = vld [vmem:[%s1311_s26 + $0xb0] sm:$0xff] }
  0x85   : > { %v515_v10 = vmul.f32 %v1332_v7, %v359_v55  ;;  %v579_v11 = vadd.f32 %v451_v61, %v419_v60  ;;  %v420_v12 = vmul.f32 %v1326_v4, %v264_v56  ;;  %v452_v13 = vmul.f32 %v1328_v5, %v296_v57  ;;  %v364_v47 = vld [vmem:[%s1311_s26 + $0x3a8] sm:$0xff]  ;;  %v301_v53 = vld [vmem:[%s1311_s26 + $0x1b0] sm:$0xff]  ;;  %v270_v60 = vld [vmem:[%s1311_s26 + $0xb8] sm:$0xff] }
  0x86   : > { %640 = vst [vmem:[%s1379_s7 + $0x68] sm:$0xff] %v572_v0  ;;  %v575_v17 = vadd.f32 %v574_v1, %v513_v48  ;;  %v577_v18 = vadd.f32 %v576_v2, %v482_v58  ;;  %v484_v19 = vmul.f32 %v1330_v6, %v328_v62  ;;  %v516_v20 = vmul.f32 %v1332_v7, %v360_v63  ;;  %v333_v58 = vld [vmem:[%s1311_s26 + $0x2b0] sm:$0xff]  ;;  %v302_v1 = vld [vmem:[%s1311_s26 + $0x1b8] sm:$0xff] }
  0x87   : > { %v580_v23 = vadd.f32 %v579_v11, %v483_v3  ;;  %v582_v24 = vadd.f32 %v452_v13, %v420_v12  ;;  %v421_v25 = vmul.f32 %v1326_v4, %v265_v8  ;;  %v453_v26 = vmul.f32 %v1328_v5, %v297_v9  ;;  %v334_v2 = vld [vmem:[%s1311_s26 + $0x2b8] sm:$0xff]  ;;  %v271_v12 = vld [vmem:[%s1311_s26 + $0xc0] sm:$0xff] }
  0x88   : > { %641 = vst [vmem:[%s1379_s7 + $0x70] sm:$0xff] %v575_v17  ;;  %v578_v30 = vadd.f32 %v577_v18, %v514_v59  ;;  %v485_v31 = vmul.f32 %v1330_v6, %v329_v14  ;;  %v517_v32 = vmul.f32 %v1332_v7, %v361_v15  ;;  %v422_v33 = vmul.f32 %v1326_v4, %v266_v16  ;;  %v365_v59 = vld [vmem:[%s1311_s26 + $0x3b0] sm:$0xff]  ;;  %v366_v11 = vld [vmem:[%s1311_s26 + $0x3b8] sm:$0xff]  ;;  %v303_v13 = vld [vmem:[%s1311_s26 + $0x1c0] sm:$0xff] }
  0x89   : > { %v581_v35 = vadd.f32 %v580_v23, %v515_v10  ;;  %v583_v36 = vadd.f32 %v582_v24, %v484_v19  ;;  %v585_v37 = vadd.f32 %v453_v26, %v421_v25  ;;  %v454_v38 = vmul.f32 %v1328_v5, %v298_v21  ;;  %v335_v18 = vld [vmem:[%s1311_s26 + $0x2c0] sm:$0xff]  ;;  %v272_v24 = vld [vmem:[%s1311_s26 + $0xc8] sm:$0xff] }
  0x8a   : > { %642 = vst [vmem:[%s1379_s7 + $0x78] sm:$0xff] %v578_v30  ;;  %v486_v42 = vmul.f32 %v1330_v6, %v330_v22  ;;  %v518_v43 = vmul.f32 %v1332_v7, %v362_v27  ;;  %v423_v44 = vmul.f32 %v1326_v4, %v267_v28  ;;  %v455_v45 = vmul.f32 %v1328_v5, %v299_v29  ;;  %v367_v23 = vld [vmem:[%s1311_s26 + $0x3c0] sm:$0xff]  ;;  %v304_v25 = vld [vmem:[%s1311_s26 + $0x1c8] sm:$0xff] }
  0x8b   : > { %643 = vst [vmem:[%s1379_s7 + $0x80] sm:$0xff] %v581_v35  ;;  %v584_v48 = vadd.f32 %v583_v36, %v516_v20  ;;  %v586_v49 = vadd.f32 %v585_v37, %v485_v31  ;;  %v588_v50 = vadd.f32 %v454_v38, %v422_v33  ;;  %v487_v51 = vmul.f32 %v1330_v6, %v331_v34  ;;  %v336_v30 = vld [vmem:[%s1311_s26 + $0x2c8] sm:$0xff]  ;;  %v273_v36 = vld [vmem:[%s1311_s26 + $0xd0] sm:$0xff] }
  0x8c   : > { %v519_v54 = vmul.f32 %v1332_v7, %v363_v39  ;;  %v591_v55 = vadd.f32 %v455_v45, %v423_v44  ;;  %v424_v56 = vmul.f32 %v1326_v4, %v268_v40  ;;  %v456_v57 = vmul.f32 %v1328_v5, %v300_v41  ;;  %v368_v31 = vld [vmem:[%s1311_s26 + $0x3c8] sm:$0xff]  ;;  %v305_v37 = vld [vmem:[%s1311_s26 + $0x1d0] sm:$0xff]  ;;  %v274_v44 = vld [vmem:[%s1311_s26 + $0xd8] sm:$0xff] }
  0x8d   : > { %644 = vst [vmem:[%s1379_s7 + $0x88] sm:$0xff] %v584_v48  ;;  %v587_v61 = vadd.f32 %v586_v49, %v517_v32  ;;  %v589_v62 = vadd.f32 %v588_v50, %v486_v42  ;;  %v488_v63 = vmul.f32 %v1330_v6, %v332_v46  ;;  %v520_v0 = vmul.f32 %v1332_v7, %v364_v47  ;;  %v337_v42 = vld [vmem:[%s1311_s26 + $0x2d0] sm:$0xff]  ;;  %v306_v49 = vld [vmem:[%s1311_s26 + $0x1d8] sm:$0xff] }
  0x8e   : > { %v592_v3 = vadd.f32 %v591_v55, %v487_v51  ;;  %v594_v8 = vadd.f32 %v456_v57, %v424_v56  ;;  %v425_v9 = vmul.f32 %v1326_v4, %v269_v52  ;;  %v457_v10 = vmul.f32 %v1328_v5, %v301_v53  ;;  %v338_v50 = vld [vmem:[%s1311_s26 + $0x2d8] sm:$0xff]  ;;  %v275_v56 = vld [vmem:[%s1311_s26 + $0xe0] sm:$0xff] }
  0x8f   : > { %645 = vst [vmem:[%s1379_s7 + $0x90] sm:$0xff] %v587_v61  ;;  %v590_v14 = vadd.f32 %v589_v62, %v518_v43  ;;  %v489_v15 = vmul.f32 %v1330_v6, %v333_v58  ;;  %v521_v16 = vmul.f32 %v1332_v7, %v365_v59  ;;  %v426_v17 = vmul.f32 %v1326_v4, %v270_v60  ;;  %v369_v43 = vld [vmem:[%s1311_s26 + $0x3d0] sm:$0xff]  ;;  %v370_v55 = vld [vmem:[%s1311_s26 + $0x3d8] sm:$0xff]  ;;  %v307_v57 = vld [vmem:[%s1311_s26 + $0x1e0] sm:$0xff] }
  0x90   : > { %v593_v19 = vadd.f32 %v592_v3, %v519_v54  ;;  %v595_v20 = vadd.f32 %v594_v8, %v488_v63  ;;  %v597_v21 = vadd.f32 %v457_v10, %v425_v9  ;;  %v458_v22 = vmul.f32 %v1328_v5, %v302_v1  ;;  %v339_v62 = vld [vmem:[%s1311_s26 + $0x2e0] sm:$0xff]  ;;  %v276_v8 = vld [vmem:[%s1311_s26 + $0xe8] sm:$0xff] }
  0x91   : > { %646 = vst [vmem:[%s1379_s7 + $0x98] sm:$0xff] %v590_v14  ;;  %v490_v26 = vmul.f32 %v1330_v6, %v334_v2  ;;  %v522_v27 = vmul.f32 %v1332_v7, %v366_v11  ;;  %v427_v28 = vmul.f32 %v1326_v4, %v271_v12  ;;  %v459_v29 = vmul.f32 %v1328_v5, %v303_v13  ;;  %v371_v3 = vld [vmem:[%s1311_s26 + $0x3e0] sm:$0xff]  ;;  %v308_v9 = vld [vmem:[%s1311_s26 + $0x1e8] sm:$0xff] }
  0x92   : > { %647 = vst [vmem:[%s1379_s7 + $0xa0] sm:$0xff] %v593_v19  ;;  %v596_v32 = vadd.f32 %v595_v20, %v520_v0  ;;  %v598_v33 = vadd.f32 %v597_v21, %v489_v15  ;;  %v600_v34 = vadd.f32 %v458_v22, %v426_v17  ;;  %v491_v35 = vmul.f32 %v1330_v6, %v335_v18  ;;  %v340_v14 = vld [vmem:[%s1311_s26 + $0x2e8] sm:$0xff]  ;;  %v277_v20 = vld [vmem:[%s1311_s26 + $0xf0] sm:$0xff] }
  0x93   : > { %v523_v38 = vmul.f32 %v1332_v7, %v367_v23  ;;  %v603_v39 = vadd.f32 %v459_v29, %v427_v28  ;;  %v428_v40 = vmul.f32 %v1326_v4, %v272_v24  ;;  %v460_v41 = vmul.f32 %v1328_v5, %v304_v25  ;;  %v372_v15 = vld [vmem:[%s1311_s26 + $0x3e8] sm:$0xff]  ;;  %v309_v21 = vld [vmem:[%s1311_s26 + $0x1f0] sm:$0xff]  ;;  %v278_v28 = vld [vmem:[%s1311_s26 + $0xf8] sm:$0xff] }
  0x94   : > { %648 = vst [vmem:[%s1379_s7 + $0xa8] sm:$0xff] %v596_v32  ;;  %v599_v45 = vadd.f32 %v598_v33, %v521_v16  ;;  %v601_v46 = vadd.f32 %v600_v34, %v490_v26  ;;  %v492_v47 = vmul.f32 %v1330_v6, %v336_v30  ;;  %v524_v48 = vmul.f32 %v1332_v7, %v368_v31  ;;  %v341_v26 = vld [vmem:[%s1311_s26 + $0x2f0] sm:$0xff]  ;;  %v310_v33 = vld [vmem:[%s1311_s26 + $0x1f8] sm:$0xff] }
  0x95   : > { %v604_v51 = vadd.f32 %v603_v39, %v491_v35  ;;  %v606_v52 = vadd.f32 %v460_v41, %v428_v40  ;;  %v429_v53 = vmul.f32 %v1326_v4, %v273_v36  ;;  %v461_v54 = vmul.f32 %v1328_v5, %v305_v37 }
  0x96   : > { %649 = vst [vmem:[%s1379_s7 + $0xb0] sm:$0xff] %v599_v45  ;;  %v602_v58 = vadd.f32 %v601_v46, %v522_v27  ;;  %v493_v59 = vmul.f32 %v1330_v6, %v337_v42  ;;  %v525_v60 = vmul.f32 %v1332_v7, %v369_v43  ;;  %v430_v61 = vmul.f32 %v1326_v4, %v274_v44  ;;  %v373_v27 = vld [vmem:[%s1311_s26 + $0x3f0] sm:$0xff]  ;;  %v374_v42 = vld [vmem:[%s1311_s26 + $0x3f8] sm:$0xff] }
  0x97   : > { %v605_v63 = vadd.f32 %v604_v51, %v523_v38  ;;  %v607_v0 = vadd.f32 %v606_v52, %v492_v47  ;;  %v609_v1 = vadd.f32 %v461_v54, %v429_v53  ;;  %v462_v2 = vmul.f32 %v1328_v5, %v306_v49  ;;  %v342_v38 = vld [vmem:[%s1311_s26 + $0x2f8] sm:$0xff] }
  0x98   : > { %650 = vst [vmem:[%s1379_s7 + $0xb8] sm:$0xff] %v602_v58  ;;  %v494_v10 = vmul.f32 %v1330_v6, %v338_v50  ;;  %v526_v11 = vmul.f32 %v1332_v7, %v370_v55  ;;  %v431_v12 = vmul.f32 %v1326_v4, %v275_v56  ;;  %v463_v13 = vmul.f32 %v1328_v5, %v307_v57 }
  0x99   : > { %651 = vst [vmem:[%s1379_s7 + $0xc0] sm:$0xff] %v605_v63  ;;  %v608_v16 = vadd.f32 %v607_v0, %v524_v48  ;;  %v610_v17 = vadd.f32 %v609_v1, %v493_v59  ;;  %v612_v18 = vadd.f32 %v462_v2, %v430_v61  ;;  %v495_v19 = vmul.f32 %v1330_v6, %v339_v62 }
  0x9a   : > { %v527_v22 = vmul.f32 %v1332_v7, %v371_v3  ;;  %v615_v23 = vadd.f32 %v463_v13, %v431_v12  ;;  %v432_v24 = vmul.f32 %v1326_v4, %v276_v8  ;;  %v464_v25 = vmul.f32 %v1328_v5, %v308_v9 }
  0x9b   : > { %652 = vst [vmem:[%s1379_s7 + $0xc8] sm:$0xff] %v608_v16  ;;  %v611_v29 = vadd.f32 %v610_v17, %v525_v60  ;;  %v613_v30 = vadd.f32 %v612_v18, %v494_v10  ;;  %v496_v31 = vmul.f32 %v1330_v6, %v340_v14  ;;  %v528_v32 = vmul.f32 %v1332_v7, %v372_v15 }
  0x9c   : > { %v616_v34 = vadd.f32 %v615_v23, %v495_v19  ;;  %v618_v35 = vadd.f32 %v464_v25, %v432_v24  ;;  %v433_v36 = vmul.f32 %v1326_v4, %v277_v20  ;;  %v465_v37 = vmul.f32 %v1328_v5, %v309_v21 }
  0x9d   : > { %653 = vst [vmem:[%s1379_s7 + $0xd0] sm:$0xff] %v611_v29  ;;  %v614_v39 = vadd.f32 %v613_v30, %v526_v11  ;;  %v497_v40 = vmul.f32 %v1330_v6, %v341_v26  ;;  %v529_v41 = vmul.f32 %v1332_v7, %v373_v27  ;;  %v434_v43 = vmul.f32 %v1326_v4, %v278_v28 }
  0x9e   : > { %v617_v44 = vadd.f32 %v616_v34, %v527_v22  ;;  %v619_v45 = vadd.f32 %v618_v35, %v496_v31  ;;  %v621_v46 = vadd.f32 %v465_v37, %v433_v36  ;;  %v466_v47 = vmul.f32 %v1328_v5, %v310_v33 }
  0x9f   : > { %654 = vst [vmem:[%s1379_s7 + $0xd8] sm:$0xff] %v614_v39  ;;  %v498_v48 = vmul.f32 %v1330_v6, %v342_v38  ;;  %v530_v51 = vmul.f32 %v1332_v7, %v374_v42 }
  0xa0   : > { %655 = vst [vmem:[%s1379_s7 + $0xe0] sm:$0xff] %v617_v44  ;;  %v620_v49 = vadd.f32 %v619_v45, %v528_v32  ;;  %v622_v50 = vadd.f32 %v621_v46, %v497_v40  ;;  %v624_v52 = vadd.f32 %v466_v47, %v434_v43 }
  0xa2   : > { %656 = vst [vmem:[%s1379_s7 + $0xe8] sm:$0xff] %v620_v49  ;;  %v623_v4 = vadd.f32 %v622_v50, %v529_v41  ;;  %v625_v53 = vadd.f32 %v624_v52, %v498_v48 }
  0xa4   : > { %657 = vst [vmem:[%s1379_s7 + $0xf0] sm:$0xff] %v623_v4  ;;  %v626_v5 = vadd.f32 %v625_v53, %v530_v51 }
  0xa6   : > { %658 = vst [vmem:[%s1379_s7 + $0xf8] sm:$0xff] %v626_v5 }
  0xa7   : > { %973 = shalt.err (!%p970_p3)
}
  0xa8   : > { %s974_s26 = scalar_lea.hbm %s1630_s28, 4096  ;;  %s978_s20 = scalar_lea.hbm %s1726_s27, 24576 }
  0xa9   : > { %p975_p9 = scmp.ne.s32.totalorder %s1630_s28, %s974_s26  ;;  %p979_p0 = scmp.lt.u32.totalorder %s1630_s28, %s1726_s27 }
  0xaa   : > { %p980_p4 = scmp.lt.u32.totalorder %s978_s20, %s974_s26  ;;  %p982_p7 = scmp.lt.u32.totalorder %s974_s26, %s1630_s28 }
  0xab   : > { %p976_p11 = pnand %p975_p9, %p1727_p12 }
  0xac   : > { %p981_p5 = por %p980_p4, %p979_p0 }
  0xad   : > { %p977_p6 = pneg %p976_p11 }
  0xae   : > { %p983_p13 = por %p982_p7, %p981_p5 }
  0xb0   : > { %p984_p8 = pnand %p983_p13, %p977_p6 }
  0xb2   : > { %987 = shalt.err (!%p984_p8)
}
  0xb3   : > { %s1098_s7 = smov 128   ;;  %s1099_s30 = smov 8  }
  0xb4   : > { %827 = dma.vmem_to_hbm [thread:$0]  (%p1727_p12), %s1624_s16, 4096, %s1630_s28, %s660_s22, %s1098_s7, %s1098_s7, %s1099_s30  }
  0xb5 PF: > { %s1728_s21 = sld [smem:[#allocation14_spill]]  ;;  %s1729_s15 = sld [smem:[#allocation21_spill]] }
  0xb6   : > { %p833_p2 = scmp.ge.s32.totalorder %s1086_s19, 2 }
  0xbb   : > { %s690_s2 = sand.u32 1, %s1728_s21   ;;  %p1730_p10 = scmp.ne.s32.totalorder %s1729_s15, 0 }
  0xbc   : > { %s691_s9 = scalar_lea.sflag [#allocation4], %s690_s2 }
  0xbd   : > { %p830_p1 = pnand %p833_p2, %p1730_p10 }
  0xbf   : > { %1041 = dma.done.wait (!%p830_p1), %s691_s9, 4096  }
  0xc0   : > { %1043 = vsyncadd (!%p830_p1), %s691_s9, 4294963200  ;;  %s21_s19 = sadd.s32 1, %s1086_s19   ;;  %s1731_s25 = sld [smem:[#allocation19_spill]] }
  0xc1   : > { %p18_p3 = scmp.ge.s32.totalorder %s21_s19, 8   ;;  %s1732_s8 = sld [smem:[#allocation15_spill]] }
  0xc2   : > { %s1733_s14 = sld [smem:[#allocation20_spill]]  ;;  %s1734_s15 = sld [smem:[#allocation16_spill]] }
  0xc3   : > { %s1735_s17 = sld [smem:[#allocation17_spill]]  ;;  %s1736_s28 = sld [smem:[#allocation18_spill]] }
  0xc4   : > { %s1737_s9 = smov %s1050_s10  ;;  %s1738_s10 = smov %s1054_s11 }
  0xc5   : > { %s1740_s12 = smov %s1062_s13  ;;  %s1742_s16 = smov %s1082_s18 }
  0xc6   : > { %s1739_s11 = smov %s1731_s25  ;;  %20 = sbr.rel (!%p18_p3) target bundleno = 13 (0xd), region = 91 }
  0xc7   : > { %s1741_s13 = smov %s1732_s8 }
  0xc9   : > { %s1743_s18 = smov %s1736_s28 }
  0xcd   :  { %696 = vsyncpa [#allocation3], 1 }
  0xce   :  { %698 = vsyncpa [#allocation3 + $0x1], 1 }
  0xcf   :  { %699 = vsyncpa [#allocation6], 1 }
  0xd0   :  { %701 = vsyncpa [#allocation6 + $0x1], 1 }
  0xd1   :  { %702 = vsyncpa [#allocation4], 1 }
  0xd2   :  { %704 = vsyncpa [#allocation4 + $0x1], 1 }

</bundles_post_ra>
